<compile_context>
chip_gen: v5e
topology: v5e:2x2
jax: 0.10.0
libtpu: 0.0.40
codegen_flags: <defaults>
</compile_context>

<pallas_src>
import math

import jax
import jax.numpy as jnp
from jax.experimental import pallas as pl
from jax.experimental.pallas import tpu as pltpu

_LN_EPS = 1e-12


def _ln_f32(x, gamma, beta):
    """Row-wise LayerNorm in f32 (torch semantics: biased variance)."""
    mean = jnp.mean(x, axis=-1, keepdims=True)
    cent = x - mean
    var = jnp.mean(cent * cent, axis=-1, keepdims=True)
    inv = jax.lax.rsqrt(var + jnp.float32(_LN_EPS))
    return cent * inv * gamma.astype(jnp.float32) + beta.astype(jnp.float32)


def _encoder_kernel_boxes(feats_ref, boxes_ref,
                          wv_ref, bv_ref, gv_ref, bev_ref,
                          wb_ref, bb_ref, gb_ref, beb_ref,
                          out_ref):
    x = jnp.dot(feats_ref[...], wv_ref[...], preferred_element_type=jnp.float32)
    x = x + bv_ref[...].astype(jnp.float32)
    x = _ln_f32(x, gv_ref[...], bev_ref[...])

    y = jnp.dot(boxes_ref[...], wb_ref[...], preferred_element_type=jnp.float32)
    y = y + bb_ref[...].astype(jnp.float32)
    y = _ln_f32(y, gb_ref[...], beb_ref[...])

    out_ref[...] = ((x + y) * 0.5).astype(out_ref.dtype)


def _encoder_kernel_no_boxes(feats_ref, wv_ref, bv_ref, gv_ref, bev_ref, out_ref):
    x = jnp.dot(feats_ref[...], wv_ref[...], preferred_element_type=jnp.float32)
    x = x + bv_ref[...].astype(jnp.float32)
    x = _ln_f32(x, gv_ref[...], bev_ref[...])
    out_ref[...] = x.astype(out_ref.dtype)


def visual_feat_encoder(feats, boxes, params, *, block_rows: int = 512):
    """Fused VisualFeatEncoder forward.

    feats : (..., feat_dim)
    boxes : (..., pos_dim) or None
    params: dict with
        visn_w (feat_dim, H), visn_b (H,), visn_ln_g (H,), visn_ln_b (H,),
        box_w  (pos_dim,  H), box_b  (H,), box_ln_g  (H,), box_ln_b  (H,)
    Dropout is treated as identity (inference / eval mode).
    """
    # TODO(synk): training-mode dropout (pltpu.prng_* Bernoulli mask) not implemented;
    # forward assumes eval mode, matching nn.Dropout at inference.
    wv = params["visn_w"]
    feat_dim = feats.shape[-1]
    H = wv.shape[-1]
    lead = feats.shape[:-1]
    N = math.prod(lead) if lead else 1

    feats2d = feats.reshape(N, feat_dim)
    out_dtype = feats.dtype
    itemsize = jnp.dtype(out_dtype).itemsize

    bm = min(block_rows, N)
    grid = (pl.cdiv(N, bm),)

    row_map = lambda i: (i, 0)
    const_map = lambda i: (0, 0)

    def as_row(v):
        return v.reshape(1, H)

    bv = as_row(params["visn_b"])
    gv = as_row(params["visn_ln_g"])
    bev = as_row(params["visn_ln_b"])

    compiler_params = pltpu.CompilerParams(
        dimension_semantics=("parallel",),        # row blocks are independent
        vmem_limit_bytes=32 * 1024 * 1024,        # safe on v5e/v6e/v7x
    )

    if boxes is not None:
        pos_dim = boxes.shape[-1]
        boxes2d = boxes.reshape(N, pos_dim)
        wb = params["box_w"]
        bb = as_row(params["box_b"])
        gb = as_row(params["box_ln_g"])
        beb = as_row(params["box_ln_b"])

        cost = pl.CostEstimate(
            flops=2 * N * (feat_dim + pos_dim) * H + 12 * N * H,
            transcendentals=2 * N,
            bytes_accessed=itemsize * (feats2d.size + boxes2d.size + wv.size
                                       + wb.size + 8 * H + N * H),
        )

        out2d = pl.pallas_call(
            _encoder_kernel_boxes,
            out_shape=jax.ShapeDtypeStruct((N, H), out_dtype),
            grid_spec=pltpu.PrefetchScalarGridSpec(
                num_scalar_prefetch=0,
                grid=grid,
                in_specs=[
                    pl.BlockSpec((bm, feat_dim), row_map),
                    pl.BlockSpec((bm, pos_dim), row_map),
                    pl.BlockSpec((feat_dim, H), const_map),
                    pl.BlockSpec((1, H), const_map),
                    pl.BlockSpec((1, H), const_map),
                    pl.BlockSpec((1, H), const_map),
                    pl.BlockSpec((pos_dim, H), const_map),
                    pl.BlockSpec((1, H), const_map),
                    pl.BlockSpec((1, H), const_map),
                    pl.BlockSpec((1, H), const_map),
                ],
                out_specs=pl.BlockSpec((bm, H), row_map),
            ),
            compiler_params=compiler_params,
            cost_estimate=cost,
        )(feats2d, boxes2d, wv, bv, gv, bev, wb, bb, gb, beb)
    else:
        cost = pl.CostEstimate(
            flops=2 * N * feat_dim * H + 6 * N * H,
            transcendentals=N,
            bytes_accessed=itemsize * (feats2d.size + wv.size + 4 * H + N * H),
        )

        out2d = pl.pallas_call(
            _encoder_kernel_no_boxes,
            out_shape=jax.ShapeDtypeStruct((N, H), out_dtype),
            grid_spec=pltpu.PrefetchScalarGridSpec(
                num_scalar_prefetch=0,
                grid=grid,
                in_specs=[
                    pl.BlockSpec((bm, feat_dim), row_map),
                    pl.BlockSpec((feat_dim, H), const_map),
                    pl.BlockSpec((1, H), const_map),
                    pl.BlockSpec((1, H), const_map),
                    pl.BlockSpec((1, H), const_map),
                ],
                out_specs=pl.BlockSpec((bm, H), row_map),
            ),
            compiler_params=compiler_params,
            cost_estimate=cost,
        )(feats2d, wv, bv, gv, bev)

    return out2d.reshape(*lead, H)


# ----------------------------- pure-JAX reference -----------------------------

def _ln_ref(x, g, b):
    mean = jnp.mean(x, axis=-1, keepdims=True)
    var = jnp.mean((x - mean) ** 2, axis=-1, keepdims=True)
    return (x - mean) * jax.lax.rsqrt(var + _LN_EPS) * g + b


def encoder_ref(feats, boxes, p):
    x = _ln_ref(feats @ p["visn_w"] + p["visn_b"], p["visn_ln_g"], p["visn_ln_b"])
    if boxes is None:
        return x
    y = _ln_ref(boxes @ p["box_w"] + p["box_b"], p["box_ln_g"], p["box_ln_b"])
    return (x + y) / 2


if __name__ == "__main__":
    key = jax.random.PRNGKey(0)
    B, S = 2, 8                 # batch, number of visual objects
    feat_dim, pos_dim, hidden = 32, 4, 32
    ks = jax.random.split(key, 10)

    feats = jax.random.normal(ks[0], (B, S, feat_dim), dtype=jnp.float32)
    boxes = jax.random.uniform(ks[1], (B, S, pos_dim), dtype=jnp.float32)

    params = {
        "visn_w": 0.1 * jax.random.normal(ks[2], (feat_dim, hidden), jnp.float32),
        "visn_b": 0.1 * jax.random.normal(ks[3], (hidden,), jnp.float32),
        "visn_ln_g": 1.0 + 0.1 * jax.random.normal(ks[4], (hidden,), jnp.float32),
        "visn_ln_b": 0.1 * jax.random.normal(ks[5], (hidden,), jnp.float32),
        "box_w": 0.1 * jax.random.normal(ks[6], (pos_dim, hidden), jnp.float32),
        "box_b": 0.1 * jax.random.normal(ks[7], (hidden,), jnp.float32),
        "box_ln_g": 1.0 + 0.1 * jax.random.normal(ks[8], (hidden,), jnp.float32),
        "box_ln_b": 0.1 * jax.random.normal(ks[9], (hidden,), jnp.float32),
    }

    # boxes-present path
    out = jax.block_until_ready(visual_feat_encoder(feats, boxes, params))
    ref = encoder_ref(feats, boxes, params)
    assert out.shape == (B, S, hidden) and out.dtype == feats.dtype
    assert jnp.allclose(out, ref, atol=1e-5, rtol=1e-5)

    # boxes=None path
    out2 = jax.block_until_ready(visual_feat_encoder(feats, None, params))
    ref2 = encoder_ref(feats, None, params)
    assert jnp.allclose(out2, ref2, atol=1e-5, rtol=1e-5)

    print("KERNEL_OK")
</pallas_src>

<mosaic_0001>
module attributes {stable_mosaic.version = 11 : i64} {
  func.func @_encoder_kernel_boxes(%arg0: i32, %arg1: memref<16x32xf32, #tpu.memory_space<vmem>>, %arg2: memref<16x4xf32, #tpu.memory_space<vmem>>, %arg3: memref<32x32xf32, #tpu.memory_space<vmem>>, %arg4: memref<1x32xf32, #tpu.memory_space<vmem>>, %arg5: memref<1x32xf32, #tpu.memory_space<vmem>>, %arg6: memref<1x32xf32, #tpu.memory_space<vmem>>, %arg7: memref<4x32xf32, #tpu.memory_space<vmem>>, %arg8: memref<1x32xf32, #tpu.memory_space<vmem>>, %arg9: memref<1x32xf32, #tpu.memory_space<vmem>>, %arg10: memref<1x32xf32, #tpu.memory_space<vmem>>, %arg11: memref<16x32xf32, #tpu.memory_space<vmem>>) attributes {dimension_semantics = [#tpu.dimension_semantics<parallel>], iteration_bounds = array<i64: 1>, scalar_prefetch = 0 : i64, scratch_operands = 0 : i64, tpu.core_type = #tpu.core_type<tc>, window_params = [{transform_indices = @transform_0, window_bounds = array<i64: 16, 32>}, {transform_indices = @transform_1, window_bounds = array<i64: 16, 4>}, {pipeline_mode = #tpu.pipeline_mode<synchronous>, transform_indices = @transform_2, window_bounds = array<i64: 32, 32>}, {pipeline_mode = #tpu.pipeline_mode<synchronous>, transform_indices = @transform_3, window_bounds = array<i64: 1, 32>}, {pipeline_mode = #tpu.pipeline_mode<synchronous>, transform_indices = @transform_4, window_bounds = array<i64: 1, 32>}, {pipeline_mode = #tpu.pipeline_mode<synchronous>, transform_indices = @transform_5, window_bounds = array<i64: 1, 32>}, {pipeline_mode = #tpu.pipeline_mode<synchronous>, transform_indices = @transform_6, window_bounds = array<i64: 4, 32>}, {pipeline_mode = #tpu.pipeline_mode<synchronous>, transform_indices = @transform_7, window_bounds = array<i64: 1, 32>}, {pipeline_mode = #tpu.pipeline_mode<synchronous>, transform_indices = @transform_8, window_bounds = array<i64: 1, 32>}, {pipeline_mode = #tpu.pipeline_mode<synchronous>, transform_indices = @transform_9, window_bounds = array<i64: 1, 32>}, {transform_indices = @transform_10, window_bounds = array<i64: 16, 32>}]} {
    %c0 = arith.constant 0 : index
    %c0_0 = arith.constant 0 : index
    %0 = vector.load %arg1[%c0, %c0_0] : memref<16x32xf32, #tpu.memory_space<vmem>>, vector<16x32xf32>
    %c0_1 = arith.constant 0 : index
    %c0_2 = arith.constant 0 : index
    %1 = vector.load %arg3[%c0_1, %c0_2] : memref<32x32xf32, #tpu.memory_space<vmem>>, vector<32x32xf32>
    %cst = arith.constant dense<0.000000e+00> : vector<16x32xf32>
    %2 = tpu.matmul %0, %1, %cst {dimension_numbers = #tpu.dot_dimension_numbers<[1], [0], [0], [1], [0, 0, 1, 1], [], []>} : vector<16x32xf32>, vector<32x32xf32>, vector<16x32xf32> -> vector<16x32xf32>
    %c0_3 = arith.constant 0 : index
    %c0_4 = arith.constant 0 : index
    %3 = vector.load %arg4[%c0_3, %c0_4] : memref<1x32xf32, #tpu.memory_space<vmem>>, vector<1x32xf32>
    %4 = vector.broadcast %3 : vector<1x32xf32> to vector<16x32xf32>
    %5 = arith.addf %2, %4 : vector<16x32xf32>
    %c0_5 = arith.constant 0 : index
    %c0_6 = arith.constant 0 : index
    %6 = vector.load %arg5[%c0_5, %c0_6] : memref<1x32xf32, #tpu.memory_space<vmem>>, vector<1x32xf32>
    %c0_7 = arith.constant 0 : index
    %c0_8 = arith.constant 0 : index
    %7 = vector.load %arg6[%c0_7, %c0_8] : memref<1x32xf32, #tpu.memory_space<vmem>>, vector<1x32xf32>
    %cst_9 = arith.constant dense<0.000000e+00> : vector<16xf32>
    %8 = vector.multi_reduction <add>, %5, %cst_9 [1] : vector<16x32xf32> to vector<16xf32>
    %9 = vector.shape_cast %8 : vector<16xf32> to vector<16x1xf32>
    %cst_10 = arith.constant 3.200000e+01 : f32
    %10 = vector.broadcast %cst_10 : f32 to vector<16x1xf32>
    %11 = arith.divf %9, %10 : vector<16x1xf32>
    %12 = vector.broadcast %11 : vector<16x1xf32> to vector<16x32xf32>
    %13 = arith.subf %5, %12 : vector<16x32xf32>
    %14 = arith.mulf %13, %13 : vector<16x32xf32>
    %cst_11 = arith.constant dense<0.000000e+00> : vector<16xf32>
    %15 = vector.multi_reduction <add>, %14, %cst_11 [1] : vector<16x32xf32> to vector<16xf32>
    %16 = vector.shape_cast %15 : vector<16xf32> to vector<16x1xf32>
    %cst_12 = arith.constant 3.200000e+01 : f32
    %17 = vector.broadcast %cst_12 : f32 to vector<16x1xf32>
    %18 = arith.divf %16, %17 : vector<16x1xf32>
    %cst_13 = arith.constant 9.99999996E-13 : f32
    %19 = vector.broadcast %cst_13 : f32 to vector<16x1xf32>
    %20 = arith.addf %18, %19 : vector<16x1xf32>
    %21 = math.rsqrt %20 : vector<16x1xf32>
    %22 = vector.broadcast %21 : vector<16x1xf32> to vector<16x32xf32>
    %23 = arith.mulf %13, %22 : vector<16x32xf32>
    %24 = vector.broadcast %6 : vector<1x32xf32> to vector<16x32xf32>
    %25 = arith.mulf %23, %24 : vector<16x32xf32>
    %26 = vector.broadcast %7 : vector<1x32xf32> to vector<16x32xf32>
    %27 = arith.addf %25, %26 : vector<16x32xf32>
    %c0_14 = arith.constant 0 : index
    %c0_15 = arith.constant 0 : index
    %28 = vector.load %arg2[%c0_14, %c0_15] : memref<16x4xf32, #tpu.memory_space<vmem>>, vector<16x4xf32>
    %c0_16 = arith.constant 0 : index
    %c0_17 = arith.constant 0 : index
    %29 = vector.load %arg7[%c0_16, %c0_17] : memref<4x32xf32, #tpu.memory_space<vmem>>, vector<4x32xf32>
    %cst_18 = arith.constant dense<0.000000e+00> : vector<16x32xf32>
    %30 = tpu.matmul %28, %29, %cst_18 {dimension_numbers = #tpu.dot_dimension_numbers<[1], [0], [0], [1], [0, 0, 1, 1], [], []>} : vector<16x4xf32>, vector<4x32xf32>, vector<16x32xf32> -> vector<16x32xf32>
    %c0_19 = arith.constant 0 : index
    %c0_20 = arith.constant 0 : index
    %31 = vector.load %arg8[%c0_19, %c0_20] : memref<1x32xf32, #tpu.memory_space<vmem>>, vector<1x32xf32>
    %32 = vector.broadcast %31 : vector<1x32xf32> to vector<16x32xf32>
    %33 = arith.addf %30, %32 : vector<16x32xf32>
    %c0_21 = arith.constant 0 : index
    %c0_22 = arith.constant 0 : index
    %34 = vector.load %arg9[%c0_21, %c0_22] : memref<1x32xf32, #tpu.memory_space<vmem>>, vector<1x32xf32>
    %c0_23 = arith.constant 0 : index
    %c0_24 = arith.constant 0 : index
    %35 = vector.load %arg10[%c0_23, %c0_24] : memref<1x32xf32, #tpu.memory_space<vmem>>, vector<1x32xf32>
    %cst_25 = arith.constant dense<0.000000e+00> : vector<16xf32>
    %36 = vector.multi_reduction <add>, %33, %cst_25 [1] : vector<16x32xf32> to vector<16xf32>
    %37 = vector.shape_cast %36 : vector<16xf32> to vector<16x1xf32>
    %cst_26 = arith.constant 3.200000e+01 : f32
    %38 = vector.broadcast %cst_26 : f32 to vector<16x1xf32>
    %39 = arith.divf %37, %38 : vector<16x1xf32>
    %40 = vector.broadcast %39 : vector<16x1xf32> to vector<16x32xf32>
    %41 = arith.subf %33, %40 : vector<16x32xf32>
    %42 = arith.mulf %41, %41 : vector<16x32xf32>
    %cst_27 = arith.constant dense<0.000000e+00> : vector<16xf32>
    %43 = vector.multi_reduction <add>, %42, %cst_27 [1] : vector<16x32xf32> to vector<16xf32>
    %44 = vector.shape_cast %43 : vector<16xf32> to vector<16x1xf32>
    %cst_28 = arith.constant 3.200000e+01 : f32
    %45 = vector.broadcast %cst_28 : f32 to vector<16x1xf32>
    %46 = arith.divf %44, %45 : vector<16x1xf32>
    %cst_29 = arith.constant 9.99999996E-13 : f32
    %47 = vector.broadcast %cst_29 : f32 to vector<16x1xf32>
    %48 = arith.addf %46, %47 : vector<16x1xf32>
    %49 = math.rsqrt %48 : vector<16x1xf32>
    %50 = vector.broadcast %49 : vector<16x1xf32> to vector<16x32xf32>
    %51 = arith.mulf %41, %50 : vector<16x32xf32>
    %52 = vector.broadcast %34 : vector<1x32xf32> to vector<16x32xf32>
    %53 = arith.mulf %51, %52 : vector<16x32xf32>
    %54 = vector.broadcast %35 : vector<1x32xf32> to vector<16x32xf32>
    %55 = arith.addf %53, %54 : vector<16x32xf32>
    %56 = arith.addf %27, %55 : vector<16x32xf32>
    %cst_30 = arith.constant 5.000000e-01 : f32
    %57 = vector.broadcast %cst_30 : f32 to vector<16x32xf32>
    %58 = arith.mulf %56, %57 : vector<16x32xf32>
    %c0_31 = arith.constant 0 : index
    %c0_32 = arith.constant 0 : index
    %59 = vector.load %arg11[%c0_31, %c0_32] : memref<16x32xf32, #tpu.memory_space<vmem>>, vector<16x32xf32>
    tpu.vector_store %arg11[%c0_31, %c0_32], %58 {strides = array<i32>} : memref<16x32xf32, #tpu.memory_space<vmem>>, vector<16x32xf32>,
    return
  }
  func.func @transform_0(%arg0: i32) -> (i32, i32) {
    %c0_i32 = arith.constant 0 : i32
    %c0_i32_0 = arith.constant 0 : i32
    return %arg0, %c0_i32 : i32, i32
  }
  func.func @transform_1(%arg0: i32) -> (i32, i32) {
    %c0_i32 = arith.constant 0 : i32
    %c0_i32_0 = arith.constant 0 : i32
    return %arg0, %c0_i32 : i32, i32
  }
  func.func @transform_2(%arg0: i32) -> (i32, i32) {
    %c0_i32 = arith.constant 0 : i32
    %c0_i32_0 = arith.constant 0 : i32
    %c0_i32_1 = arith.constant 0 : i32
    return %c0_i32, %c0_i32_0 : i32, i32
  }
  func.func @transform_3(%arg0: i32) -> (i32, i32) {
    %c0_i32 = arith.constant 0 : i32
    %c0_i32_0 = arith.constant 0 : i32
    %c0_i32_1 = arith.constant 0 : i32
    return %c0_i32, %c0_i32_0 : i32, i32
  }
  func.func @transform_4(%arg0: i32) -> (i32, i32) {
    %c0_i32 = arith.constant 0 : i32
    %c0_i32_0 = arith.constant 0 : i32
    %c0_i32_1 = arith.constant 0 : i32
    return %c0_i32, %c0_i32_0 : i32, i32
  }
  func.func @transform_5(%arg0: i32) -> (i32, i32) {
    %c0_i32 = arith.constant 0 : i32
    %c0_i32_0 = arith.constant 0 : i32
    %c0_i32_1 = arith.constant 0 : i32
    return %c0_i32, %c0_i32_0 : i32, i32
  }
  func.func @transform_6(%arg0: i32) -> (i32, i32) {
    %c0_i32 = arith.constant 0 : i32
    %c0_i32_0 = arith.constant 0 : i32
    %c0_i32_1 = arith.constant 0 : i32
    return %c0_i32, %c0_i32_0 : i32, i32
  }
  func.func @transform_7(%arg0: i32) -> (i32, i32) {
    %c0_i32 = arith.constant 0 : i32
    %c0_i32_0 = arith.constant 0 : i32
    %c0_i32_1 = arith.constant 0 : i32
    return %c0_i32, %c0_i32_0 : i32, i32
  }
  func.func @transform_8(%arg0: i32) -> (i32, i32) {
    %c0_i32 = arith.constant 0 : i32
    %c0_i32_0 = arith.constant 0 : i32
    %c0_i32_1 = arith.constant 0 : i32
    return %c0_i32, %c0_i32_0 : i32, i32
  }
  func.func @transform_9(%arg0: i32) -> (i32, i32) {
    %c0_i32 = arith.constant 0 : i32
    %c0_i32_0 = arith.constant 0 : i32
    %c0_i32_1 = arith.constant 0 : i32
    return %c0_i32, %c0_i32_0 : i32, i32
  }
  func.func @transform_10(%arg0: i32) -> (i32, i32) {
    %c0_i32 = arith.constant 0 : i32
    %c0_i32_0 = arith.constant 0 : i32
    return %arg0, %c0_i32 : i32, i32
  }
}

</mosaic_0001>

<bundles_post_ra>
// kernel: tpu_custom_call.1
= control target key start
LH: loop header
LB: loop body
LE: loop exit
PB: predicated region body
PF: predicated region fallthrough
CT: control target
= control target key end

     0   :  { %15 = vsyncpa [#allocation3], 0  ;;  %s492_s0 = inlined_call_operand.vmem [shape: f32[16,32], index: 0, kind: input, shape index: {}]   ;;  %s493_s1 = inlined_call_operand.vmem [shape: f32[16,4], index: 1, kind: input, shape index: {}]   ;;  %s494_s2 = inlined_call_operand.hbm [shape: f32[32,32], index: 2, kind: input, shape index: {}]   ;;  %s495_s3 = inlined_call_operand.vmem [shape: f32[1,32], index: 3, kind: input, shape index: {}]   ;;  %s496_s4 = inlined_call_operand.vmem [shape: f32[1,32], index: 4, kind: input, shape index: {}]   ;;  %s497_s5 = inlined_call_operand.vmem [shape: f32[1,32], index: 5, kind: input, shape index: {}]   ;;  %s498_s6 = inlined_call_operand.vmem [shape: f32[4,32], index: 6, kind: input, shape index: {}]   ;;  %s499_s7 = inlined_call_operand.vmem [shape: f32[1,32], index: 7, kind: input, shape index: {}]   ;;  %s500_s8 = inlined_call_operand.vmem [shape: f32[1,32], index: 8, kind: input, shape index: {}]   ;;  %s501_s9 = inlined_call_operand.vmem [shape: f32[1,32], index: 9, kind: input, shape index: {}]   ;;  %s502_s10 = inlined_call_operand.hbm [shape: f32[16,32], index: 10, kind: output, shape index: {}]  }
   0x1   :  { %16 = vsyncpa [#allocation4], 0  ;;  %s25_s15 = sshll.u32 %s494_s2, 4  ;;  %s360_s16 = smov [#allocation2]   ;;  %s26_s15 = int_to_ptr.hbm [resolvable:$true] %s25_s15 }
   0x2   :  { %s27_s17 = sshll.u32 %s360_s16, 4  ;;  %s361_s18 = smov 128   ;;  %s28_s17 = int_to_ptr.vmem [resolvable:$true] %s27_s17 }
   0x3   :  { %s362_s19 = smov 8  }
   0x4   :  { %33 = dma.hbm_to_vmem [thread:$0]  %s26_s15, 512, %s28_s17, [#allocation3], %s361_s18, %s361_s18, %s362_s19  }
   0x5   :  { %356 = dma.done.wait [#allocation3], 512  }
   0x6   :  { %357 = vsyncadd [#allocation3], 4294966784  ;;  %vm169_vm0 = vcmask 1043456   ;;  %vm162_vm1 = vcmask 31744   ;;  %v57_v0 = vld [vmem:[#allocation2 + $0x18] sm:$0xff]  ;;  %v155_v2 = vld [vmem:[%s493_s1] sm:$0xff] }
   0x7   :  { %v157_v1 = vld [vmem:[%s498_s6] sm:$0xf]  ;;  %81 = vmatpush.msra.mxu0 %v57_v0  ;;  %v56_v3 = vld [vmem:[#allocation2 + $0x10] sm:$0xff]  ;;  %v156_v4 = vld [vmem:[%s493_s1 + $0x8] sm:$0xff]  ;;  %282 = vmatpush.msra.mxu2 %v57_v0  ;;  %vm62_vm2 = vcmask 261120   ;;  %v363_v23 = vmov 32.0  }
   0x8   :  { %279 = vmatpush.msk.msra.mxu1 %vm169_vm0, %v157_v1  ;;  %v55_v5 = vld [vmem:[#allocation2 + $0x8] sm:$0xff]  ;;  %286 = vmatpush.msk.msra.mxu3 %vm169_vm0, %v157_v1  ;;  %v54_v6 = vld [vmem:[#allocation2] sm:$0xff]  ;;  %298 = vrcp.f32 %v363_v23  ;;  %s264_s16 = sshll.u32 %s502_s10, 4  ;;  %s265_s16 = int_to_ptr.hbm [resolvable:$true] %s264_s16 }
   0x9   :  { %280 = vmatmul.msk.f32.vlgmr.msra.gmra.mxu1 %vm162_vm1, %v155_v2  ;;  %82 = vmatpush.msra.mxu0 %v56_v3  ;;  %v52_v7 = vld [vmem:[%s492_s0] sm:$0xff]  ;;  %v53_v8 = vld [vmem:[%s492_s0 + $0x8] sm:$0xff] }
   0xa   :  { %281 = vmatmul.msk.f32.vlgmr.msra.gmra.mxu3 %vm162_vm1, %v156_v4  ;;  %283 = vmatpush.msra.mxu2 %v56_v3  ;;  %v292_v9 = vld [vmem:[%s499_s7] ss:$0 sm:$0xff] }
   0xb   :  { %83 = vmatpush.msra.mxu0 %v55_v5  ;;  %v293_v13 = vld [vmem:[%s495_s3] ss:$0 sm:$0xff] }
   0xc   :  { %284 = vmatpush.msra.mxu2 %v55_v5 }
   0xd   :  { %84 = vmatpush.msra.mxu0 %v54_v6 }
   0xe   :  { %277 = vmatmul.msk.f32.vlgmr.msra.gmra.mxu0 %vm62_vm2, %v52_v7  ;;  %285 = vmatpush.msra.mxu2 %v54_v6  ;;  %v299_v24 = vpop.eup %298 }
   0xf   :  { %278 = vmatmul.msk.f32.vlgmr.msra.gmra.mxu2 %vm62_vm2, %v53_v8  ;;  %v101_v25 = vmul.f32 32.0, %v299_v24  ;;  %vm105_vm3 = vweird.f32 %v299_v24 }
  0x11   :  { %v102_v26 = vsub.f32 1.0, %v101_v25 }
  0x13   :  { %v103_v27 = vmul.f32 %v299_v24, %v102_v26  ;;  %v296_v26 = vld [vmem:[%s497_s5] ss:$0 sm:$0xff] }
  0x15   :  { %v104_v28 = vadd.f32 %v299_v24, %v103_v27  ;;  %v297_v27 = vld [vmem:[%s501_s9] ss:$0 sm:$0xff] }
  0x17   :  { %v106_v29 = vsel %vm105_vm3, %v299_v24, %v104_v28 }
  0x86   :  { %v190_v10 = vpop.f32.mrf.mxu1 }
  0x87   :  { %v191_v11 = vadd.f32 %v292_v9, %v190_v10 }
  0x89   :  { %v198_v12 = vsel %vm62_vm2, %v191_v11, 0.0 }
  0x8a   :  { %199 = vadd.xlane.f32.xlu1 %v198_v12 }
  0x8b   :  { %v86_v14 = vpop.f32.mrf.mxu0 }
  0x8c   :  { %v87_v15 = vadd.f32 %v293_v13, %v86_v14 }
  0x8d   :  { %v193_v16 = vpop.f32.mrf.mxu3 }
  0x8e   :  { %v194_v17 = vadd.f32 %v292_v9, %v193_v16  ;;  %v94_v18 = vsel %vm62_vm2, %v87_v15, 0.0 }
  0x8f   :  { %95 = vadd.xlane.f32.xlu0 %v94_v18 }
  0x90   :  { %v201_v19 = vsel %vm62_vm2, %v194_v17, 0.0 }
  0x92   :  { %202 = vadd.xlane.f32.xlu1 %v201_v19  ;;  %v89_v20 = vpop.f32.mrf.mxu2 }
  0x93   :  { %v90_v21 = vadd.f32 %v293_v13, %v89_v20  ;;  %v295_v20 = vld [vmem:[%s496_s4] ss:$0 sm:$0xff]  ;;  %s364_s4 = smov [#allocation5]  }
  0x94   :  { %s262_s5 = sshll.u32 %s364_s4, 4  ;;  %s263_s5 = int_to_ptr.vmem [resolvable:$true] %s262_s5 }
  0x95   :  { %v97_v22 = vsel %vm62_vm2, %v90_v21, 0.0 }
  0x97   :  { %98 = vadd.xlane.f32.xlu0 %v97_v22 }
  0xfd   :  { %v200_v30 = vpop.xlane.xlu1 %199 }
  0xfe   :  { %v204_v31 = vmul.f32 %v200_v30, %v106_v29 }
 0x100   :  { %v206_v32 = vsub.f32 %v191_v11, %v204_v31 }
 0x102   :  { %v208_v33 = vmul.f32 %v206_v32, %v206_v32  ;;  %v96_v34 = vpop.xlane.xlu0 %95 }
 0x103   :  { %v107_v35 = vmul.f32 %v106_v29, %v96_v34 }
 0x104   :  { %v210_v36 = vsel %vm62_vm2, %v208_v33, 0.0 }
 0x105   :  { %v203_v37 = vpop.xlane.xlu1 %202  ;;  %211 = vadd.xlane.f32.xlu0 %v210_v36  ;;  %v454_v38 = vsub.f32 %v87_v15, %v107_v35  ;;  %v294_v15 = vld [vmem:[%s500_s8] ss:$0 sm:$0xff] }
 0x106   :  { %v205_v39 = vmul.f32 %v203_v37, %v106_v29 }
 0x107   :  { %v111_v41 = vmul.f32 %v454_v38, %v454_v38 }
 0x108   :  { %v456_v40 = vsub.f32 %v194_v17, %v205_v39 }
 0x109   :  { %v113_v42 = vsel %vm62_vm2, %v111_v41, 0.0 }
 0x10a   :  { %v209_v43 = vmul.f32 %v456_v40, %v456_v40  ;;  %114 = vadd.xlane.f32.xlu2 %v113_v42  ;;  %v99_v44 = vpop.xlane.xlu0 %98 }
 0x10b   :  { %v108_v45 = vmul.f32 %v106_v29, %v99_v44 }
 0x10c   :  { %v213_v46 = vsel %vm62_vm2, %v209_v43, 0.0 }
 0x10d   :  { %214 = vadd.xlane.f32.xlu1 %v213_v46  ;;  %v464_v47 = vsub.f32 %v90_v21, %v108_v45 }
 0x10f   :  { %v112_v48 = vmul.f32 %v464_v47, %v464_v47 }
 0x111   :  { %v116_v49 = vsel %vm62_vm2, %v112_v48, 0.0 }
 0x112   :  { %117 = vadd.xlane.f32.xlu2 %v116_v49 }
 0x178   :  { %v212_v50 = vpop.xlane.xlu0 %211 }
 0x179   :  { %v216_v51 = vmul.f32 %v212_v50, %v106_v29 }
 0x17b   :  { %v218_v52 = vadd.f32 1e-12, %v216_v51 }
 0x17d   :  { %300 = vrsqrt.f32 %v218_v52  ;;  %v115_v53 = vpop.xlane.xlu2 %114  ;;  %vm226_vm5 = vweird.f32 %v218_v52 }
 0x17e   :  { %v119_v54 = vmul.f32 %v115_v53, %v106_v29 }
 0x180   :  { %v215_v55 = vpop.xlane.xlu1 %214  ;;  %v121_v56 = vadd.f32 1e-12, %v119_v54 }
 0x181   :  { %v217_v57 = vmul.f32 %v215_v55, %v106_v29 }
 0x182   :  { %302 = vrsqrt.f32 %v121_v56  ;;  %vm129_vm8 = vweird.f32 %v121_v56 }
 0x183   :  { %v301_v58 = vpop.eup %300  ;;  %v219_v59 = vadd.f32 1e-12, %v217_v57 }
 0x184   :  { %v221_v60 = vmul.f32 %v301_v58, %v218_v52  ;;  %vm227_vm4 = vweird.f32 %v301_v58 }
 0x185   :  { %304 = vrsqrt.f32 %v219_v59  ;;  %v118_v62 = vpop.xlane.xlu2 %117  ;;  %vm228_vm6 = vmor %vm226_vm5, %vm227_vm4  ;;  %vm236_vm11 = vweird.f32 %v219_v59 }
 0x186   :  { %v222_v61 = vmul.f32 %v301_v58, %v221_v60  ;;  %v120_v63 = vmul.f32 %v118_v62, %v106_v29 }
 0x188   :  { %v223_v0 = vmul.f32 0.5, %v222_v61  ;;  %v303_v1 = vpop.eup %302  ;;  %v122_v2 = vadd.f32 1e-12, %v120_v63 }
 0x189   :  { %v124_v4 = vmul.f32 %v303_v1, %v121_v56  ;;  %vm130_vm7 = vweird.f32 %v303_v1 }
 0x18a   :  { %v224_v3 = vsub.f32 1.5, %v223_v0  ;;  %306 = vrsqrt.f32 %v122_v2  ;;  %vm131_vm10 = vmor %vm129_vm8, %vm130_vm7  ;;  %vm139_vm14 = vweird.f32 %v122_v2 }
 0x18b   :  { %v305_v5 = vpop.eup %304  ;;  %v125_v7 = vmul.f32 %v303_v1, %v124_v4 }
 0x18c   :  { %v225_v6 = vmul.f32 %v301_v58, %v224_v3  ;;  %v231_v8 = vmul.f32 %v305_v5, %v219_v59  ;;  %vm237_vm9 = vweird.f32 %v305_v5 }
 0x18d   :  { %v126_v10 = vmul.f32 0.5, %v125_v7  ;;  %vm238_vm12 = vmor %vm236_vm11, %vm237_vm9 }
 0x18e   :  { %v229_v9 = vsel %vm228_vm6, %v301_v58, %v225_v6  ;;  %v232_v11 = vmul.f32 %v305_v5, %v231_v8 }
 0x18f   :  { %v127_v12 = vsub.f32 1.5, %v126_v10  ;;  %v240_v16 = vmul.f32 %v229_v9, %v206_v32 }
 0x190   :  { %v233_v13 = vmul.f32 0.5, %v232_v11  ;;  %v307_v14 = vpop.eup %306 }
 0x191   :  { %v128_v17 = vmul.f32 %v303_v1, %v127_v12  ;;  %v134_v19 = vmul.f32 %v307_v14, %v122_v2  ;;  %v245_v24 = vmul.f32 %v294_v15, %v240_v16  ;;  %vm140_vm13 = vweird.f32 %v307_v14 }
 0x192   :  { %v234_v18 = vsub.f32 1.5, %v233_v13  ;;  %vm141_vm15 = vmor %vm139_vm14, %vm140_vm13 }
 0x193   :  { %v132_v21 = vsel %vm131_vm10, %v303_v1, %v128_v17  ;;  %v135_v23 = vmul.f32 %v307_v14, %v134_v19  ;;  %v250_v34 = vadd.f32 %v297_v27, %v245_v24 }
 0x194   :  { %v235_v22 = vmul.f32 %v305_v5, %v234_v18  ;;  %v143_v25 = vmul.f32 %v132_v21, %v454_v38 }
 0x195   :  { %v136_v29 = vmul.f32 0.5, %v135_v23 }
 0x196   :  { %v239_v28 = vsel %vm238_vm12, %v305_v5, %v235_v22  ;;  %v148_v30 = vmul.f32 %v295_v20, %v143_v25 }
 0x197   :  { %v137_v31 = vsub.f32 1.5, %v136_v29  ;;  %v241_v32 = vmul.f32 %v239_v28, %v456_v40 }
 0x198   :  { %v153_v33 = vadd.f32 %v296_v26, %v148_v30 }
 0x199   :  { %v138_v35 = vmul.f32 %v307_v14, %v137_v31  ;;  %v246_v38 = vmul.f32 %v294_v15, %v241_v32 }
 0x19a   :  { %v252_v36 = vadd.f32 %v250_v34, %v153_v33 }
 0x19b   :  { %v142_v37 = vsel %vm141_vm15, %v307_v14, %v138_v35  ;;  %v251_v44 = vadd.f32 %v297_v27, %v246_v38 }
 0x19c   :  { %v144_v39 = vmul.f32 %v142_v37, %v464_v47  ;;  %v254_v41 = vmul.f32 0.5, %v252_v36 }
 0x19e   :  { %v149_v42 = vmul.f32 %v295_v20, %v144_v39  ;;  %256 = vst.msk [vmem:[#allocation5] sm:$0xff] %vm62_vm2, %v254_v41 }
 0x1a0   :  { %v154_v43 = vadd.f32 %v296_v26, %v149_v42 }
 0x1a2   :  { %v253_v40 = vadd.f32 %v251_v44, %v154_v43 }
 0x1a4   :  { %v255_v45 = vmul.f32 0.5, %v253_v40 }
 0x1a6   :  { %257 = vst.msk [vmem:[#allocation5 + $0x8] sm:$0xff] %vm62_vm2, %v255_v45 }
 0x1a7   :  { %270 = dma.vmem_to_hbm [thread:$0]  %s263_s5, 256, %s265_s16, [#allocation4], %s361_s18, %s361_s18, %s362_s19  }
 0x1a8   :  { %358 = dma.done.wait [#allocation4], 256  }
 0x1a9   :  { %359 = vsyncadd [#allocation4], 4294967040 }
 0x1aa   :  { %275 = vsyncpa [#allocation3], 1 }
 0x1ab   :  { %276 = vsyncpa [#allocation4], 1 }

</bundles_post_ra>
